<compile_context>
chip_gen: v6e
topology: v6e:2x2x1
jax: 0.10.0
libtpu: 0.0.40
codegen_flags: <defaults>
</compile_context>

<pallas_src>
import functools

import jax
import jax.numpy as jnp
from jax.experimental import pallas as pl
from jax.experimental.pallas import tpu as pltpu

LANE = 128
SUB = 8


def _round_up(n, m):
    return (n + m - 1) // m * m


# --------------------------------------------------------------------------- kernel
def mlp_kernel(x_ref, w1_ref, b1_ref, w2_ref, b2_ref, w3_ref, b3_ref, o_ref):
    cdt = w1_ref.dtype  # MXU operand dtype (bf16 or f32); accumulation is always f32.
    x = x_ref[...].astype(cdt)                                    # per-tile cast (VPU)
    # fc1 + relu
    h = jnp.dot(x, w1_ref[...], preferred_element_type=jnp.float32)
    h = jnp.maximum(h + b1_ref[...], 0.0).astype(cdt)             # narrow h right after ReLU
    # fc2 + relu
    h = jnp.dot(h, w2_ref[...], preferred_element_type=jnp.float32)
    h = jnp.maximum(h + b2_ref[...], 0.0).astype(cdt)
    # fc3 (no activation)
    out = jnp.dot(h, w3_ref[...], preferred_element_type=jnp.float32)
    o_ref[...] = (out + b3_ref[...]).astype(o_ref.dtype)


# --------------------------------------------------------------------- capability probes
@functools.cache
def _buffered1_supported():
    """Probe pl.Buffered(1) support once with a tiny kernel (never wrap the real call)."""
    try:
        def k(x_ref, w_ref, o_ref):
            o_ref[...] = x_ref[...] + w_ref[...]

        f = pl.pallas_call(
            k,
            out_shape=jax.ShapeDtypeStruct((16, 128), jnp.float32),
            grid=(2,),
            in_specs=[
                pl.BlockSpec((8, 128), lambda i: (i, 0)),
                pl.BlockSpec((8, 128), lambda i: (0, 0), pipeline_mode=pl.Buffered(1)),
            ],
            out_specs=pl.BlockSpec((8, 128), lambda i: (i, 0)),
        )
        jax.block_until_ready(
            f(jnp.zeros((16, 128), jnp.float32), jnp.zeros((8, 128), jnp.float32)))
        return True
    except Exception:   # probe only: isolated to Buffered(1) on trivial shapes
        return False


@functools.cache
def _vmem_capacity_bytes():
    try:
        return int(pltpu.get_tpu_info().vmem_capacity_bytes)
    except Exception:
        return 64 << 20  # conservative fallback (v7x per-TensorCore VMEM)


# ------------------------------------------------------------------------ param prep
def prepare_params(w1, b1, w2, b2, w3, b3, *, compute_dtype=jnp.bfloat16):
    """One-time weight prep (amortize padding + casting across forward calls).

    Only the hidden dim (which feeds another matmul) is zero-padded to a lane
    multiple; num_in / num_out stay as-is so x and the output need no copies.
    Weights are cast to compute_dtype (MXU operands); biases stay f32 (VPU epilogue).
    Zero-padded rows/cols are inert through matmul + ReLU.
    """
    cdt = jnp.dtype(compute_dtype)
    hidden = w1.shape[1]
    ph = _round_up(hidden, LANE) - hidden
    w1p = jnp.pad(w1, ((0, 0), (0, ph))).astype(cdt)           # [num_in, hidden_p]
    w2p = jnp.pad(w2, ((0, ph), (0, ph))).astype(cdt)          # [hidden_p, hidden_p]
    w3p = jnp.pad(w3, ((0, ph), (0, 0))).astype(cdt)           # [hidden_p, num_out]
    b1p = jnp.pad(b1, ((0, 0), (0, ph))).astype(jnp.float32)   # [1, hidden_p]
    b2p = jnp.pad(b2, ((0, 0), (0, ph))).astype(jnp.float32)
    b3p = b3.astype(jnp.float32)                               # [1, num_out]
    return (w1p, b1p, w2p, b2p, w3p, b3p)


def _choose_block_b(B, hidden_p, vmem_cap, requested):
    # f32 hidden-intermediate budget: tighter on 64 MiB parts (v7x), larger on 128 MiB.
    h_budget = (4 << 20) if vmem_cap <= (64 << 20) else (12 << 20)
    bb = min(int(requested), _round_up(B, SUB))
    bb = max(SUB, _round_up(bb, SUB))
    bb = min(bb, max(SUB, (h_budget // (hidden_p * 4)) // SUB * SUB))
    # Give the "parallel" grid axis >= ~4 steps (>= 2 per TensorCore on v7x megacore).
    if B > 4 * SUB:
        bb = min(bb, max(SUB, _round_up(pl.cdiv(B, 4), SUB)))
    return bb


# --------------------------------------------------------------------------- forward
def two_layer_fc(x, prepared, *, block_b=512):
    """x: [B, num_in]; prepared: output of prepare_params. Returns [B, num_out] in x.dtype."""
    w1p, b1p, w2p, b2p, w3p, b3p = prepared
    B, num_in = x.shape
    assert w1p.shape[0] == num_in, "x feature dim does not match prepared W1"
    hidden_p = w1p.shape[1]
    num_out = w3p.shape[1]
    out_dtype = x.dtype
    cdt = w1p.dtype

    vmem_cap = _vmem_capacity_bytes()
    block_b = _choose_block_b(B, hidden_p, vmem_cap, block_b)
    grid = (pl.cdiv(B, block_b),)

    single_buffer_weights = _buffered1_supported()
    wbuf = 1 if single_buffer_weights else 2

    # VMEM footprint for the buffering path actually taken.
    csz = cdt.itemsize
    xsz = x.dtype.itemsize
    osz = jnp.dtype(out_dtype).itemsize
    weight_bytes = (num_in * hidden_p + hidden_p * hidden_p + hidden_p * num_out) * csz
    bias_bytes = (2 * hidden_p + num_out) * 4
    io_bytes = 2 * block_b * (num_in * xsz + num_out * osz)       # double-buffered x/out
    h_bytes = block_b * hidden_p * (2 * 4 + csz)                  # f32 h (x2) + narrow h
    vmem_needed = wbuf * (weight_bytes + bias_bytes) + io_bytes + h_bytes
    vmem_budget = int(vmem_cap) * 3 // 4                          # ~25% headroom
    if vmem_needed > vmem_budget:
        # TODO(synk): for hidden dims whose resident weights exceed the VMEM budget
        # (e.g. f32 hidden>=2048 on v7x), add a hidden-dim reduction grid axis
        # ("arbitrary") with an f32 VMEM accumulator instead of resident weights.
        raise ValueError(
            f"TwoLayerFC needs ~{vmem_needed >> 20} MiB VMEM, budget {vmem_budget >> 20} MiB;"
            " use bfloat16 weights or a K-tiled reduction path.")
    vmem_limit = min(vmem_budget, max(32 << 20, vmem_needed * 3 // 2))

    flops = 2 * B * (num_in * hidden_p + hidden_p * hidden_p + hidden_p * num_out)
    bytes_accessed = int(B * num_in * xsz + weight_bytes + bias_bytes + B * num_out * osz)
    cost = pl.CostEstimate(flops=flops, transcendentals=0, bytes_accessed=bytes_accessed)

    if single_buffer_weights:
        def const_spec(shape):
            return pl.BlockSpec(shape, lambda i: (0, 0), pipeline_mode=pl.Buffered(1))
    else:
        def const_spec(shape):
            return pl.BlockSpec(shape, lambda i: (0, 0))

    return pl.pallas_call(
        mlp_kernel,
        out_shape=jax.ShapeDtypeStruct((B, num_out), out_dtype),
        grid_spec=pltpu.PrefetchScalarGridSpec(
            num_scalar_prefetch=0,
            grid=grid,
            in_specs=[
                pl.BlockSpec((block_b, num_in), lambda i: (i, 0)),   # x tile (pipelined)
                const_spec((num_in, hidden_p)),                      # W1 (grid-invariant)
                const_spec((1, hidden_p)),                           # b1
                const_spec((hidden_p, hidden_p)),                    # W2
                const_spec((1, hidden_p)),                           # b2
                const_spec((hidden_p, num_out)),                     # W3
                const_spec((1, num_out)),                            # b3
            ],
            out_specs=pl.BlockSpec((block_b, num_out), lambda i: (i, 0)),
        ),
        compiler_params=pltpu.CompilerParams(
            dimension_semantics=("parallel",),
            vmem_limit_bytes=int(vmem_limit),
        ),
        cost_estimate=cost,
    )(x, w1p, b1p, w2p, b2p, w3p, b3p)


# ----------------------------------------------------------------------- test helpers
def init_params(key, num_in, num_out, hidden_dim, dtype=jnp.float32):
    """Deterministic init mimicking torch.nn.Linear default (uniform +-1/sqrt(fan_in))."""
    ks = jax.random.split(key, 6)

    def lin(kw, kb, fan_in, fan_out):
        bound = 1.0 / (fan_in ** 0.5)
        # weights stored as [in, out] (transposed vs PyTorch's [out, in])
        w = jax.random.uniform(kw, (fan_in, fan_out), dtype, -bound, bound)
        b = jax.random.uniform(kb, (1, fan_out), dtype, -bound, bound)
        return w, b

    w1, b1 = lin(ks[0], ks[1], num_in, hidden_dim)
    w2, b2 = lin(ks[2], ks[3], hidden_dim, hidden_dim)
    w3, b3 = lin(ks[4], ks[5], hidden_dim, num_out)
    return w1, b1, w2, b2, w3, b3


def reference(x, w1, b1, w2, b2, w3, b3):
    hp = jax.lax.Precision.HIGHEST
    h = jnp.maximum(jnp.dot(x, w1, precision=hp) + b1, 0.0)
    h = jnp.maximum(jnp.dot(h, w2, precision=hp) + b2, 0.0)
    return jnp.dot(h, w3, precision=hp) + b3


if __name__ == "__main__":
    key = jax.random.PRNGKey(0)
    k_x, k_p, k_x2, k_x3 = jax.random.split(key, 4)

    # Small shapes consistent with the MADDPG actor/critic MLP forward.
    batch, num_in, hidden_dim, num_out = 8, 32, 64, 16
    raw = init_params(k_p, num_in, num_out, hidden_dim)

    # 1) f32 MXU operands, single-tile batch.
    x = jax.random.normal(k_x, (batch, num_in), jnp.float32)
    prep_f32 = prepare_params(*raw, compute_dtype=jnp.float32)
    out = jax.block_until_ready(two_layer_fc(x, prep_f32))
    ref = reference(x, *raw)
    assert out.shape == (batch, num_out)
    assert float(jnp.max(jnp.abs(out - ref))) < 3e-2, "f32 path mismatch"

    # 2) default bf16 operands + ragged batch (exercises the partial last grid block).
    prep_bf16 = prepare_params(*raw)  # compute_dtype defaults to bfloat16
    x2 = jax.random.normal(k_x2, (5, num_in), jnp.float32)
    out2 = jax.block_until_ready(two_layer_fc(x2, prep_bf16))
    ref2 = reference(x2, *raw)
    assert out2.shape == (5, num_out)
    assert float(jnp.max(jnp.abs(out2 - ref2))) < 7e-2, "bf16 ragged path mismatch"

    # 3) multi-step "parallel" grid with a partial last tile (B=300 -> 4 steps of 80).
    x3 = jax.random.normal(k_x3, (300, num_in), jnp.float32)
    out3 = jax.block_until_ready(two_layer_fc(x3, prep_bf16))
    ref3 = reference(x3, *raw)
    assert out3.shape == (300, num_out)
    assert float(jnp.max(jnp.abs(out3 - ref3))) < 7e-2, "multi-step grid mismatch"

    print("KERNEL_OK")
</pallas_src>

<mosaic_0001>
module attributes {stable_mosaic.version = 11 : i64} {
  func.func @k(%arg0: i32, %arg1: memref<8x128xf32, #tpu.memory_space<vmem>>, %arg2: memref<8x128xf32, #tpu.memory_space<vmem>>, %arg3: memref<8x128xf32, #tpu.memory_space<vmem>>) attributes {dimension_semantics = [#tpu.dimension_semantics<arbitrary>], iteration_bounds = array<i64: 2>, scalar_prefetch = 0 : i64, scratch_operands = 0 : i64, tpu.core_type = #tpu.core_type<tc>, window_params = [{transform_indices = @transform_0, window_bounds = array<i64: 8, 128>}, {pipeline_mode = #tpu.pipeline_mode<synchronous>, transform_indices = @transform_1, window_bounds = array<i64: 8, 128>}, {transform_indices = @transform_2, window_bounds = array<i64: 8, 128>}]} {
    %c0 = arith.constant 0 : index
    %c0_0 = arith.constant 0 : index
    %0 = vector.load %arg1[%c0, %c0_0] : memref<8x128xf32, #tpu.memory_space<vmem>>, vector<8x128xf32>
    %c0_1 = arith.constant 0 : index
    %c0_2 = arith.constant 0 : index
    %1 = vector.load %arg2[%c0_1, %c0_2] : memref<8x128xf32, #tpu.memory_space<vmem>>, vector<8x128xf32>
    %2 = arith.addf %0, %1 : vector<8x128xf32>
    %c0_3 = arith.constant 0 : index
    %c0_4 = arith.constant 0 : index
    %3 = vector.load %arg3[%c0_3, %c0_4] : memref<8x128xf32, #tpu.memory_space<vmem>>, vector<8x128xf32>
    tpu.vector_store %arg3[%c0_3, %c0_4], %2 {strides = array<i32>} : memref<8x128xf32, #tpu.memory_space<vmem>>, vector<8x128xf32>,
    return
  }
  func.func @transform_0(%arg0: i32) -> (i32, i32) {
    %c0_i32 = arith.constant 0 : i32
    %c0_i32_0 = arith.constant 0 : i32
    return %arg0, %c0_i32 : i32, i32
  }
  func.func @transform_1(%arg0: i32) -> (i32, i32) {
    %c0_i32 = arith.constant 0 : i32
    %c0_i32_0 = arith.constant 0 : i32
    %c0_i32_1 = arith.constant 0 : i32
    return %c0_i32, %c0_i32_0 : i32, i32
  }
  func.func @transform_2(%arg0: i32) -> (i32, i32) {
    %c0_i32 = arith.constant 0 : i32
    %c0_i32_0 = arith.constant 0 : i32
    return %arg0, %c0_i32 : i32, i32
  }
}

module attributes {stable_mosaic.version = 11 : i64} {
  func.func @mlp_kernel(%arg0: i32, %arg1: memref<8x32xf32, #tpu.memory_space<vmem>>, %arg2: memref<32x128xf32, #tpu.memory_space<vmem>>, %arg3: memref<1x128xf32, #tpu.memory_space<vmem>>, %arg4: memref<128x128xf32, #tpu.memory_space<vmem>>, %arg5: memref<1x128xf32, #tpu.memory_space<vmem>>, %arg6: memref<128x16xf32, #tpu.memory_space<vmem>>, %arg7: memref<1x16xf32, #tpu.memory_space<vmem>>, %arg8: memref<8x16xf32, #tpu.memory_space<vmem>>) attributes {dimension_semantics = [#tpu.dimension_semantics<parallel>], iteration_bounds = array<i64: 1>, scalar_prefetch = 0 : i64, scratch_operands = 0 : i64, tpu.core_type = #tpu.core_type<tc>, window_params = [{transform_indices = @transform_0, window_bounds = array<i64: 8, 32>}, {pipeline_mode = #tpu.pipeline_mode<synchronous>, transform_indices = @transform_1, window_bounds = array<i64: 32, 128>}, {pipeline_mode = #tpu.pipeline_mode<synchronous>, transform_indices = @transform_2, window_bounds = array<i64: 1, 128>}, {pipeline_mode = #tpu.pipeline_mode<synchronous>, transform_indices = @transform_3, window_bounds = array<i64: 128, 128>}, {pipeline_mode = #tpu.pipeline_mode<synchronous>, transform_indices = @transform_4, window_bounds = array<i64: 1, 128>}, {pipeline_mode = #tpu.pipeline_mode<synchronous>, transform_indices = @transform_5, window_bounds = array<i64: 128, 16>}, {pipeline_mode = #tpu.pipeline_mode<synchronous>, transform_indices = @transform_6, window_bounds = array<i64: 1, 16>}, {transform_indices = @transform_7, window_bounds = array<i64: 8, 16>}]} {
    %c0 = arith.constant 0 : index
    %c0_0 = arith.constant 0 : index
    %0 = vector.load %arg1[%c0, %c0_0] : memref<8x32xf32, #tpu.memory_space<vmem>>, vector<8x32xf32>
    %c0_1 = arith.constant 0 : index
    %c0_2 = arith.constant 0 : index
    %1 = vector.load %arg2[%c0_1, %c0_2] : memref<32x128xf32, #tpu.memory_space<vmem>>, vector<32x128xf32>
    %cst = arith.constant dense<0.000000e+00> : vector<8x128xf32>
    %2 = tpu.matmul %0, %1, %cst {dimension_numbers = #tpu.dot_dimension_numbers<[1], [0], [0], [1], [0, 0, 1, 1], [], []>} : vector<8x32xf32>, vector<32x128xf32>, vector<8x128xf32> -> vector<8x128xf32>
    %c0_3 = arith.constant 0 : index
    %c0_4 = arith.constant 0 : index
    %3 = vector.load %arg3[%c0_3, %c0_4] : memref<1x128xf32, #tpu.memory_space<vmem>>, vector<1x128xf32>
    %4 = vector.broadcast %3 : vector<1x128xf32> to vector<8x128xf32>
    %5 = arith.addf %2, %4 : vector<8x128xf32>
    %cst_5 = arith.constant 0.000000e+00 : f32
    %6 = vector.broadcast %cst_5 : f32 to vector<8x128xf32>
    %7 = arith.maximumf %5, %6 : vector<8x128xf32>
    %c0_6 = arith.constant 0 : index
    %c0_7 = arith.constant 0 : index
    %8 = vector.load %arg4[%c0_6, %c0_7] : memref<128x128xf32, #tpu.memory_space<vmem>>, vector<128x128xf32>
    %cst_8 = arith.constant dense<0.000000e+00> : vector<8x128xf32>
    %9 = tpu.matmul %7, %8, %cst_8 {dimension_numbers = #tpu.dot_dimension_numbers<[1], [0], [0], [1], [0, 0, 1, 1], [], []>} : vector<8x128xf32>, vector<128x128xf32>, vector<8x128xf32> -> vector<8x128xf32>
    %c0_9 = arith.constant 0 : index
    %c0_10 = arith.constant 0 : index
    %10 = vector.load %arg5[%c0_9, %c0_10] : memref<1x128xf32, #tpu.memory_space<vmem>>, vector<1x128xf32>
    %11 = vector.broadcast %10 : vector<1x128xf32> to vector<8x128xf32>
    %12 = arith.addf %9, %11 : vector<8x128xf32>
    %cst_11 = arith.constant 0.000000e+00 : f32
    %13 = vector.broadcast %cst_11 : f32 to vector<8x128xf32>
    %14 = arith.maximumf %12, %13 : vector<8x128xf32>
    %c0_12 = arith.constant 0 : index
    %c0_13 = arith.constant 0 : index
    %15 = vector.load %arg6[%c0_12, %c0_13] : memref<128x16xf32, #tpu.memory_space<vmem>>, vector<128x16xf32>
    %cst_14 = arith.constant dense<0.000000e+00> : vector<8x16xf32>
    %16 = tpu.matmul %14, %15, %cst_14 {dimension_numbers = #tpu.dot_dimension_numbers<[1], [0], [0], [1], [0, 0, 1, 1], [], []>} : vector<8x128xf32>, vector<128x16xf32>, vector<8x16xf32> -> vector<8x16xf32>
    %c0_15 = arith.constant 0 : index
    %c0_16 = arith.constant 0 : index
    %17 = vector.load %arg7[%c0_15, %c0_16] : memref<1x16xf32, #tpu.memory_space<vmem>>, vector<1x16xf32>
    %18 = vector.broadcast %17 : vector<1x16xf32> to vector<8x16xf32>
    %19 = arith.addf %16, %18 : vector<8x16xf32>
    %c0_17 = arith.constant 0 : index
    %c0_18 = arith.constant 0 : index
    %20 = vector.load %arg8[%c0_17, %c0_18] : memref<8x16xf32, #tpu.memory_space<vmem>>, vector<8x16xf32>
    tpu.vector_store %arg8[%c0_17, %c0_18], %19 {strides = array<i32>} : memref<8x16xf32, #tpu.memory_space<vmem>>, vector<8x16xf32>,
    return
  }
  func.func @transform_0(%arg0: i32) -> (i32, i32) {
    %c0_i32 = arith.constant 0 : i32
    %c0_i32_0 = arith.constant 0 : i32
    return %arg0, %c0_i32 : i32, i32
  }
  func.func @transform_1(%arg0: i32) -> (i32, i32) {
    %c0_i32 = arith.constant 0 : i32
    %c0_i32_0 = arith.constant 0 : i32
    %c0_i32_1 = arith.constant 0 : i32
    return %c0_i32, %c0_i32_0 : i32, i32
  }
  func.func @transform_2(%arg0: i32) -> (i32, i32) {
    %c0_i32 = arith.constant 0 : i32
    %c0_i32_0 = arith.constant 0 : i32
    %c0_i32_1 = arith.constant 0 : i32
    return %c0_i32, %c0_i32_0 : i32, i32
  }
  func.func @transform_3(%arg0: i32) -> (i32, i32) {
    %c0_i32 = arith.constant 0 : i32
    %c0_i32_0 = arith.constant 0 : i32
    %c0_i32_1 = arith.constant 0 : i32
    return %c0_i32, %c0_i32_0 : i32, i32
  }
  func.func @transform_4(%arg0: i32) -> (i32, i32) {
    %c0_i32 = arith.constant 0 : i32
    %c0_i32_0 = arith.constant 0 : i32
    %c0_i32_1 = arith.constant 0 : i32
    return %c0_i32, %c0_i32_0 : i32, i32
  }
  func.func @transform_5(%arg0: i32) -> (i32, i32) {
    %c0_i32 = arith.constant 0 : i32
    %c0_i32_0 = arith.constant 0 : i32
    %c0_i32_1 = arith.constant 0 : i32
    return %c0_i32, %c0_i32_0 : i32, i32
  }
  func.func @transform_6(%arg0: i32) -> (i32, i32) {
    %c0_i32 = arith.constant 0 : i32
    %c0_i32_0 = arith.constant 0 : i32
    %c0_i32_1 = arith.constant 0 : i32
    return %c0_i32, %c0_i32_0 : i32, i32
  }
  func.func @transform_7(%arg0: i32) -> (i32, i32) {
    %c0_i32 = arith.constant 0 : i32
    %c0_i32_0 = arith.constant 0 : i32
    return %arg0, %c0_i32 : i32, i32
  }
}

</mosaic_0001>

<bundles_post_ra>
// kernel: tpu_custom_call.1
= control target key start
LH: loop header
LB: loop body
LE: loop exit
PB: predicated region body
PF: predicated region fallthrough
CT: control target
= control target key end

     0   :  { %7 = vsyncpa [#allocation3], 0  ;;  %s649_s0 = inlined_call_operand.hbm [shape: f32[16,128], index: 0, kind: input, shape index: {}]   ;;  %s650_s1 = inlined_call_operand.hbm [shape: f32[8,128], index: 1, kind: input, shape index: {}]   ;;  %s651_s2 = inlined_call_operand.hbm [shape: f32[16,128], index: 2, kind: output, shape index: {}]  }
   0x1   :  { %9 = vsyncpa [#allocation3 + $0x1], 0 }
   0x2   :  { %10 = vsyncpa [#allocation6], 0 }
   0x3   :  { %11 = vsyncpa [#allocation4], 0 }
   0x4   :  { %13 = vsyncpa [#allocation4 + $0x1], 0  ;;  %s483_s9 = smov 0   ;;  %s485_s10 = smov 0  }
   0x5   :  { %s487_s11 = smov 0   ;;  %s489_s12 = smov 0  }
   0x6 LB: > { %s504_s13 = sadd.s32 4294967295, %s463_s12   ;;  %s270_s14 = sadd.s32 4294967294, %s463_s12   ;;  %s463_s12 = sphi %s489_s12, %s674_s12   ;;  %s459_s11 = sphi %s487_s11, %s673_s11   ;;  %s455_s10 = sphi %s485_s10, %s672_s10   ;;  %s451_s9 = sphi %s483_s9, %s671_s9  }
   0x7   : > { %p39_p0 = scmp.ne.s32.totalorder %s455_s10, %s451_s9  ;;  %p652_p1 = scmp.eq.s32.totalorder %s504_s13, 0 }
   0x8   : > { %p90_p3 = scmp.eq.s32.totalorder %s270_s14, 1  ;;  %p271_p5 = scmp.ge.s32.totalorder %s463_s12, 1 }
   0x9   : > { %p513_p4 = por %p652_p1, %p39_p0  ;;  %p97_p7 = scmp.lt.s32.totalorder %s463_s12, 3 }
   0xa   : > { %p518_p6 = por %p90_p3, %p39_p0  ;;  %s465_s18 = smov [#allocation5]  }
   0xb   : > { %s656_s15 = scalar_select %p513_p4, 1, 0 }
   0xc   : > { %s657_s16 = scalar_select %p518_p6, 1, 0 }
   0xd   : > { %p523_p8 = pnand %p271_p5, %p97_p7  ;;  %s110_s19 = sshll.u32 %s465_s18, 4  ;;  %s111_s19 = int_to_ptr.vmem [resolvable:$true] %s110_s19 }
   0xe   : > { %s531_s20 = sadd.s32 1, %s463_s12   ;;  %s26_s24 = sadd.s32 1, %s459_s11 }
   0xf   : > { %s658_s17 = scalar_select %p523_p8, 1, 0 }
  0x10   : > { %p292_p10 = pneg %p523_p8  ;;  %s23_s22 = ssub.s32 %s463_s12, %s531_s20 }
  0x11   : > { %p541_p12 = scmp.eq.s32.totalorder %s23_s22, 0  ;;  %p33_p13 = scmp.ne.s32.totalorder %s459_s11, %s455_s10 }
  0x12   : > { %p535_p11 = pnand %p292_p10, %p652_p1  ;;  %s352_s25 = scalar_lea.vmem %s111_s19, 128 }
  0x13   : > { %p353_p3 = scmp.ne.s32.totalorder %s111_s19, %s352_s25  ;;  %p360_p9 = scmp.lt.s32.totalorder %s111_s19, %s111_s19 }
  0x14   : > { %p343_p0 = pneg %p535_p11  ;;  %p361_p2 = scmp.lt.s32.totalorder %s352_s25, %s352_s25 }
  0x16   : > { %p355_p5 = pnand %p353_p3, %p343_p0  ;;  %p362_p10 = por %p361_p2, %p360_p9 }
  0x18   : > { %p356_p7 = pneg %p355_p5 }
  0x1a   : > { %p363_p1 = pnand %p362_p10, %p356_p7 }
  0x1c   : > { %366 = shalt.err (!%p363_p1)
}
  0x1d   : > { %295 = dma.hbm_to_vmem [thread:$0]  (!%p535_p11), %s650_s1, 128, %s111_s19, [#allocation6]  }
  0x1e   : > { %s558_s28 = scalar_select %p541_p12, %s459_s11, %s26_s24  }
  0x1f   : > { %p34_p1 = scmp.eq.s32.totalorder %s463_s12, 0  ;;  %p661_p2 = scmp.eq.s32.totalorder %s504_s13, 1 }
  0x20   : > { %p305_p0 = scmp.lt.s32.totalorder %s463_s12, 2  ;;  %s121_s30 = sand.u32 1, %s459_s11  }
  0x21   : > { %p566_p9 = por %p661_p2, %p33_p13  ;;  %p35_p3 = por %p34_p1, %p33_p13 }
  0x22   : > { %s274_s3 = sshll.u32 %s121_s30, 3  ;;  %s275_s4 = sshll.u32 %s463_s12, 7 }
  0x23   : > { %s662_s29 = scalar_select %p566_p9, 1, 0 }
  0x24   : > { %s579_s7 = scalar_lea.hbm %s649_s0, %s275_s4  ;;  %s125_s8 = scalar_lea.vmem [#allocation2], %s274_s3 }
  0x25   : > { %s132_s14 = sshll.u32 %s125_s8, 4  ;;  %p581_p11 = pnand %p305_p0, %p35_p3  ;;  %s133_s14 = int_to_ptr.vmem [resolvable:$true] %s132_s14 }
  0x26   : > { %s122_s19 = scalar_lea.sflag [#allocation3], %s121_s30  ;;  %s367_s21 = scalar_lea.hbm %s579_s7, 128 }
  0x27   : > { %p368_p12 = scmp.ne.s32.totalorder %s579_s7, %s367_s21  ;;  %p369_p13 = pneg %p581_p11 }
  0x28   : > { %s372_s24 = scalar_lea.hbm %s649_s0, 256  ;;  %p373_p10 = scmp.lt.s32.totalorder %s579_s7, %s649_s0 }
  0x29   : > { %p370_p5 = pnand %p369_p13, %p368_p12  ;;  %p374_p1 = scmp.lt.s32.totalorder %s372_s24, %s367_s21 }
  0x2b   : > { %p371_p7 = pneg %p370_p5  ;;  %p375_p2 = por %p374_p1, %p373_p10 }
  0x2d   : > { %p376_p0 = pnand %p375_p2, %p371_p7 }
  0x2f   : > { %379 = shalt.err (!%p376_p0)
}
  0x30   : > { %s380_s27 = scalar_lea.vmem %s133_s14, 128  ;;  %s466_s30 = smov [#allocation2]  }
  0x31   : > { %p381_p3 = scmp.ne.s32.totalorder %s133_s14, %s380_s27  ;;  %s385_s3 = sshll.u32 %s466_s30, 4  ;;  %s386_s3 = int_to_ptr.vmem [resolvable:$false] %s385_s3 }
  0x32   : > { %s387_s4 = scalar_lea.vmem %s386_s3, 256  ;;  %p388_p12 = scmp.lt.s32.totalorder %s133_s14, %s386_s3 }
  0x33   : > { %p383_p6 = pnand %p381_p3, %p369_p13  ;;  %p389_p5 = scmp.lt.s32.totalorder %s387_s4, %s380_s27 }
  0x35   : > { %p384_p9 = pneg %p383_p6  ;;  %p390_p4 = por %p389_p5, %p388_p12 }
  0x37   : > { %p391_p8 = pnand %p390_p4, %p384_p9 }
  0x39   : > { %394 = shalt.err (!%p391_p8)
}
  0x3a   : > { %299 = dma.hbm_to_vmem [thread:$0]  (!%p581_p11), %s579_s7, 128, %s133_s14, %s122_s19  }
  0x3b   : > { %p664_p7 = scmp.ne.s32.totalorder %s658_s17, 0 }
  0x3c   : > { %s602_s5 = sand.u32 (!%p664_p7), 1, %s455_s10   ;;  %p665_p6 = scmp.ne.s32.totalorder (!%p664_p7), %s656_s15, 0 }
  0x3d   : > { %141 = sbr.rel (%p664_p7) target bundleno = 95 (0x5f), region = 28  ;;  %s277_s6 = sshll.u32 (!%p664_p7), %s602_s5, 3 }
  0x3e   : > { %s144_s8 = scalar_lea.sflag (!%p664_p7), [#allocation3], %s602_s5  ;;  %s147_s21 = scalar_lea.vmem (!%p664_p7), [#allocation2], %s277_s6 }
  0x42   : > { %438 = dma.done.wait (%p665_p6), %s144_s8, 128  }
  0x43   : > { %440 = vsyncadd (%p665_p6), %s144_s8, 4294967168  ;;  %p666_p4 = scmp.eq.s32.totalorder %s504_s13, 0 }
  0x45   : > { %442 = dma.done.wait (%p666_p4), [#allocation6], 128   ;;  %p667_p8 = pmov %p666_p4 }
  0x46   : > { %s171_s17 = scalar_lea.vmem [#allocation7], %s277_s6  ;;  %s281_s14 = sshll.u32 %s504_s13, 7  ;;  %v172_v0 = vld [vmem:[%s147_s21] sm:$0xff]  ;;  %v173_v1 = vld [vmem:[#allocation5] sm:$0xff] }
  0x47   : > { %444 = vsyncadd (%p667_p8), [#allocation6], 4294967168  ;;  %s190_s7 = sshll.u32 %s171_s17, 4  ;;  %v174_v2 = vadd.f32 %v173_v1, %v172_v0  ;;  %s188_s15 = scalar_lea.hbm %s651_s2, %s281_s14  ;;  %s191_s7 = int_to_ptr.vmem [resolvable:$true] %s190_s7 }
  0x48   : > { %s177_s22 = scalar_lea.sflag [#allocation4], %s602_s5  ;;  %s395_s23 = scalar_lea.vmem %s191_s7, 128 }
  0x49   : > { %175 = vst [vmem:[%s171_s17] sm:$0xff] %v174_v2  ;;  %p396_p9 = scmp.ne.s32.totalorder %s191_s7, %s395_s23  ;;  %p668_p11 = scmp.ne.s32.totalorder %s662_s29, 0 }
  0x4a   : > { %s467_s24 = smov [#allocation7]  }
  0x4b   : > { %p397_p13 = pnand %p396_p9, %p668_p11  ;;  %s399_s25 = sshll.u32 %s467_s24, 4  ;;  %s400_s25 = int_to_ptr.vmem [resolvable:$false] %s399_s25 }
  0x4c   : > { %s401_s26 = scalar_lea.vmem %s400_s25, 256  ;;  %p402_p1 = scmp.lt.s32.totalorder %s191_s7, %s400_s25 }
  0x4d   : > { %p398_p10 = pneg %p397_p13  ;;  %p403_p2 = scmp.lt.s32.totalorder %s401_s26, %s395_s23 }
  0x4f   : > { %p404_p0 = por %p403_p2, %p402_p1 }
  0x51   : > { %p405_p3 = pnand %p404_p0, %p398_p10 }
  0x53   : > { %408 = shalt.err (!%p405_p3)
}
  0x54   : > { %s409_s13 = scalar_lea.hbm %s188_s15, 128  ;;  %s413_s3 = scalar_lea.hbm %s651_s2, 256 }
  0x55   : > { %p410_p12 = scmp.ne.s32.totalorder %s188_s15, %s409_s13  ;;  %p414_p6 = scmp.lt.s32.totalorder %s188_s15, %s651_s2 }
  0x56   : > { %p415_p4 = scmp.lt.s32.totalorder %s413_s3, %s409_s13 }
  0x57   : > { %p411_p5 = pnand %p410_p12, %p668_p11 }
  0x58   : > { %p416_p8 = por %p415_p4, %p414_p6 }
  0x59   : > { %p412_p7 = pneg %p411_p5 }
  0x5b   : > { %p417_p9 = pnand %p416_p8, %p412_p7 }
  0x5d   : > { %420 = shalt.err (!%p417_p9)
}
  0x5e   : > { %290 = dma.vmem_to_hbm [thread:$0]  (%p668_p11), %s191_s7, 128, %s188_s15, %s177_s22  }
  0x5f PF: > { %s202_s6 = sand.u32 1, %s451_s9   ;;  %p669_p13 = scmp.ne.s32.totalorder %s657_s16, 0 }
  0x60   : > { %p670_p10 = scmp.ge.s32.totalorder %s463_s12, 2  ;;  %s203_s8 = scalar_lea.sflag [#allocation4], %s202_s6 }
  0x62   : > { %p301_p1 = pnand %p670_p10, %p669_p13 }
  0x64   : > { %p302_p2 = pneg %p301_p1 }
  0x66   : > { %446 = dma.done.wait (%p302_p2), %s203_s8, 128  }
  0x67   : > { %448 = vsyncadd (%p302_p2), %s203_s8, 4294967168  ;;  %p16_p0 = scmp.ge.s32.totalorder %s531_s20, 4   ;;  %s671_s9 = smov %s455_s10 }
  0x68   : > { %s672_s10 = smov %s459_s11  ;;  %s673_s11 = smov %s558_s28 }
  0x69   : > { %s674_s12 = smov %s531_s20  ;;  %18 = sbr.rel (!%p16_p0) target bundleno = 6 (0x6), region = 77 }
  0x6e   :  { %208 = vsyncpa [#allocation3], 1 }
  0x6f   :  { %210 = vsyncpa [#allocation3 + $0x1], 1 }
  0x70   :  { %211 = vsyncpa [#allocation6], 1 }
  0x71   :  { %212 = vsyncpa [#allocation4], 1 }
  0x72   :  { %214 = vsyncpa [#allocation4 + $0x1], 1 }

// kernel: tpu_custom_call.1
= control target key start
LH: loop header
LB: loop body
LE: loop exit
PB: predicated region body
PF: predicated region fallthrough
CT: control target
= control target key end

     0   :  { %12 = vsyncpa [#allocation3], 0  ;;  %s708_s0 = inlined_call_operand.vmem [shape: f32[8,32], index: 0, kind: input, shape index: {}]   ;;  %s709_s1 = inlined_call_operand.hbm [shape: f32[32,128], index: 1, kind: input, shape index: {}]   ;;  %s710_s2 = inlined_call_operand.vmem [shape: f32[1,128], index: 2, kind: input, shape index: {}]   ;;  %s711_s3 = inlined_call_operand.vmem [shape: f32[128,128], index: 3, kind: input, shape index: {}]   ;;  %s712_s4 = inlined_call_operand.vmem [shape: f32[1,128], index: 4, kind: input, shape index: {}]   ;;  %s713_s5 = inlined_call_operand.vmem [shape: f32[128,16], index: 5, kind: input, shape index: {}]   ;;  %s714_s6 = inlined_call_operand.vmem [shape: f32[1,16], index: 6, kind: input, shape index: {}]   ;;  %s715_s7 = inlined_call_operand.hbm [shape: f32[8,16], index: 7, kind: output, shape index: {}]  }
   0x1   :  { %13 = vsyncpa [#allocation4], 0  ;;  %s506_s24 = smov [#allocation2]  }
   0x2   :  { %s21_s25 = sshll.u32 %s506_s24, 4  ;;  %s22_s25 = int_to_ptr.vmem [resolvable:$true] %s21_s25 }
   0x3   :  { %s470_s26 = scalar_lea.vmem %s22_s25, 512  ;;  %p475_p1 = scmp.lt.s32.totalorder %s22_s25, %s22_s25 }
   0x4   :  { %p471_p0 = scmp.ne.s32.totalorder %s22_s25, %s470_s26  ;;  %p476_p2 = scmp.lt.s32.totalorder %s470_s26, %s470_s26 }
   0x6   :  { %p477_p3 = por %p476_p2, %p475_p1 }
   0x8   :  { %p478_p4 = pnand %p477_p3, %p471_p0 }
   0xa   :  { %481 = shalt.err (!%p478_p4)
}
   0xb   :  { %s507_s27 = smov 128   ;;  %s508_s28 = smov 8  }
   0xc   :  { %27 = dma.hbm_to_vmem [thread:$0]  %s709_s1, 512, %s22_s25, [#allocation3], %s507_s27, %s507_s27, %s508_s28  }
   0xd   :  { %502 = dma.done.wait [#allocation3], 512  }
   0xe   :  { %503 = vsyncadd [#allocation3], 4294966784  ;;  %v509_v0 = vmov 0.0   ;;  %vm510_vm0 = vmmov 0   ;;  %v45_v1 = vld [vmem:[#allocation2 + $0x18] sm:$0xff]  ;;  %v44_v2 = vld [vmem:[#allocation2 + $0x10] sm:$0xff] }
   0xf   :  { %375 = vmatprep.subr.mxu0 %v509_v0  ;;  %383 = vmatprep.mubr.msk.f32.mxu0 %vm510_vm0, %v509_v0  ;;  %v143_v3 = vld [vmem:[%s711_s3 + $0x78] sm:$0xff]  ;;  %v43_v4 = vld [vmem:[#allocation2 + $0x8] sm:$0xff]  ;;  %v142_v5 = vld [vmem:[%s711_s3 + $0x70] sm:$0xff]  ;;  %vm53_vm1 = vcmask 261120   ;;  %s511_s25 = smov [#allocation5]   ;;  %vm315_vm2 = vcmask 130048  }
  0x10   :  { %386 = vmatprep.subr.mxu1 %v509_v0  ;;  %418 = vmatprep.mubr.msk.f32.mxu1 %vm510_vm0, %v509_v0  ;;  %v141_v6 = vld [vmem:[%s711_s3 + $0x68] sm:$0xff]  ;;  %v42_v7 = vld [vmem:[#allocation2] sm:$0xff]  ;;  %v139_v10 = vld [vmem:[%s711_s3 + $0x58] sm:$0xff]  ;;  %s323_s26 = sshll.u32 %s511_s25, 4  ;;  %s324_s26 = int_to_ptr.vmem [resolvable:$true] %s323_s26 }
  0x11   :  { %376 = vmatpush3.msra.mxu0 %v45_v1  ;;  %387 = vmatpush3.msra.mxu1 %v143_v3  ;;  %v41_v8 = vld [vmem:[%s708_s0] sm:$0xff]  ;;  %v138_v11 = vld [vmem:[%s711_s3 + $0x50] sm:$0xff]  ;;  %v137_v12 = vld [vmem:[%s711_s3 + $0x48] sm:$0xff]  ;;  %p487_p6 = scmp.lt.s32.totalorder %s324_s26, %s324_s26 }
  0x12   :  { %377 = vmatprep.subr.mxu0 %v509_v0  ;;  %388 = vmatprep.subr.mxu1 %v509_v0  ;;  %v140_v9 = vld [vmem:[%s711_s3 + $0x60] sm:$0xff]  ;;  %v135_v14 = vld [vmem:[%s711_s3 + $0x38] sm:$0xff]  ;;  %v134_v15 = vld [vmem:[%s711_s3 + $0x30] sm:$0xff] }
  0x13   :  { %378 = vmatpush3.msra.mxu0 %v44_v2  ;;  %389 = vmatpush3.msra.mxu1 %v142_v5  ;;  %v136_v13 = vld [vmem:[%s711_s3 + $0x40] sm:$0xff]  ;;  %v133_v16 = vld [vmem:[%s711_s3 + $0x28] sm:$0xff]  ;;  %v131_v18 = vld [vmem:[%s711_s3 + $0x18] sm:$0xff] }
  0x14   :  { %379 = vmatprep.subr.mxu0 %v509_v0  ;;  %390 = vmatprep.subr.mxu1 %v509_v0  ;;  %v132_v17 = vld [vmem:[%s711_s3 + $0x20] sm:$0xff]  ;;  %v130_v19 = vld [vmem:[%s711_s3 + $0x10] sm:$0xff]  ;;  %v129_v20 = vld [vmem:[%s711_s3 + $0x8] sm:$0xff] }
  0x15   :  { %380 = vmatpush3.msra.mxu0 %v43_v4  ;;  %391 = vmatpush3.msra.mxu1 %v141_v6  ;;  %v128_v21 = vld [vmem:[%s711_s3] sm:$0xff]  ;;  %v237_v22 = vld [vmem:[%s713_s5 + $0x78] sm:$0xff]  ;;  %v236_v23 = vld [vmem:[%s713_s5 + $0x70] sm:$0xff] }
  0x16   :  { %381 = vmatprep.subr.mxu0 %v509_v0  ;;  %392 = vmatprep.subr.mxu1 %v509_v0  ;;  %v235_v24 = vld [vmem:[%s713_s5 + $0x68] sm:$0xff]  ;;  %v234_v25 = vld [vmem:[%s713_s5 + $0x60] sm:$0xff]  ;;  %v233_v26 = vld [vmem:[%s713_s5 + $0x58] sm:$0xff] }
  0x17   :  { %382 = vmatpush3.msra.mxu0 %v42_v7  ;;  %393 = vmatpush3.msra.mxu1 %v140_v9  ;;  %v232_v27 = vld [vmem:[%s713_s5 + $0x50] sm:$0xff]  ;;  %v231_v28 = vld [vmem:[%s713_s5 + $0x48] sm:$0xff]  ;;  %v230_v29 = vld [vmem:[%s713_s5 + $0x40] sm:$0xff] }
  0x18   :  { %384 = vmatmul.mubr.msk.f32.vlgmr.msra.gmra.mxu0 %vm53_vm1, %v41_v8  ;;  %394 = vmatprep.subr.mxu1 %v509_v0  ;;  %v229_v30 = vld [vmem:[%s713_s5 + $0x38] sm:$0xff]  ;;  %v228_v31 = vld [vmem:[%s713_s5 + $0x30] sm:$0xff]  ;;  %v227_v32 = vld [vmem:[%s713_s5 + $0x28] sm:$0xff] }
  0x19   :  { %421 = vmatprep.subr.mxu0 %v509_v0  ;;  %395 = vmatpush3.msra.mxu1 %v139_v10  ;;  %v226_v33 = vld [vmem:[%s713_s5 + $0x20] sm:$0xff]  ;;  %v225_v34 = vld [vmem:[%s713_s5 + $0x18] sm:$0xff]  ;;  %v224_v40 = vld [vmem:[%s713_s5 + $0x10] sm:$0xff] }
  0x1a   :  { %453 = vmatprep.mubr.msk.f32.mxu0 %vm510_vm0, %v509_v0  ;;  %396 = vmatprep.subr.mxu1 %v509_v0  ;;  %v332_v35 = vld [vmem:[%s710_s2] ss:$0 sm:$0xff]  ;;  %v223_v41 = vld [vmem:[%s713_s5 + $0x8] sm:$0xff] }
  0x1b   :  { %397 = vmatpush3.msra.mxu1 %v138_v11  ;;  %422 = vmatpush3.msra.mxu0 %v237_v22  ;;  %v222_v42 = vld [vmem:[%s713_s5] sm:$0xff]  ;;  %s482_s5 = scalar_lea.vmem %s324_s26, 128 }
  0x1c   :  { %398 = vmatprep.subr.mxu1 %v509_v0  ;;  %423 = vmatprep.subr.mxu0 %v509_v0  ;;  %v334_v43 = vld [vmem:[%s712_s4] ss:$0 sm:$0xff]  ;;  %p483_p5 = scmp.ne.s32.totalorder %s324_s26, %s482_s5  ;;  %p488_p7 = scmp.lt.s32.totalorder %s482_s5, %s482_s5 }
  0x1d   :  { %399 = vmatpush3.msra.mxu1 %v137_v12  ;;  %424 = vmatpush3.msra.mxu0 %v236_v23  ;;  %v335_v48 = vld [vmem:[%s714_s6] ss:$0 sm:$0xff] }
  0x1e   :  { %400 = vmatprep.subr.mxu1 %v509_v0  ;;  %425 = vmatprep.subr.mxu0 %v509_v0  ;;  %p489_p8 = por %p488_p7, %p487_p6 }
  0x1f   :  { %401 = vmatpush3.msra.mxu1 %v136_v13  ;;  %426 = vmatpush3.msra.mxu0 %v235_v24 }
  0x20   :  { %402 = vmatprep.subr.mxu1 %v509_v0  ;;  %427 = vmatprep.subr.mxu0 %v509_v0  ;;  %p490_p9 = pnand %p489_p8, %p483_p5 }
  0x21   :  { %403 = vmatpush3.msra.mxu1 %v135_v14  ;;  %428 = vmatpush3.msra.mxu0 %v234_v25 }
  0x22   :  { %404 = vmatprep.subr.mxu1 %v509_v0  ;;  %429 = vmatprep.subr.mxu0 %v509_v0 }
  0x23   :  { %405 = vmatpush3.msra.mxu1 %v134_v15  ;;  %430 = vmatpush3.msra.mxu0 %v233_v26 }
  0x24   :  { %406 = vmatprep.subr.mxu1 %v509_v0  ;;  %431 = vmatprep.subr.mxu0 %v509_v0 }
  0x25   :  { %407 = vmatpush3.msra.mxu1 %v133_v16  ;;  %432 = vmatpush3.msra.mxu0 %v232_v27 }
  0x26   :  { %408 = vmatprep.subr.mxu1 %v509_v0  ;;  %433 = vmatprep.subr.mxu0 %v509_v0 }
  0x27   :  { %409 = vmatpush3.msra.mxu1 %v132_v17  ;;  %434 = vmatpush3.msra.mxu0 %v231_v28 }
  0x28   :  { %410 = vmatprep.subr.mxu1 %v509_v0  ;;  %435 = vmatprep.subr.mxu0 %v509_v0 }
  0x29   :  { %411 = vmatpush3.msra.mxu1 %v131_v18  ;;  %436 = vmatpush3.msra.mxu0 %v230_v29 }
  0x2a   :  { %412 = vmatprep.subr.mxu1 %v509_v0  ;;  %437 = vmatprep.subr.mxu0 %v509_v0 }
  0x2b   :  { %413 = vmatpush3.msra.mxu1 %v130_v19  ;;  %438 = vmatpush3.msra.mxu0 %v229_v30 }
  0x2c   :  { %414 = vmatprep.subr.mxu1 %v509_v0  ;;  %439 = vmatprep.subr.mxu0 %v509_v0 }
  0x2d   :  { %415 = vmatpush3.msra.mxu1 %v129_v20  ;;  %440 = vmatpush3.msra.mxu0 %v228_v31 }
  0x2e   :  { %416 = vmatprep.subr.mxu1 %v509_v0  ;;  %441 = vmatprep.subr.mxu0 %v509_v0 }
  0x2f   :  { %417 = vmatpush3.msra.mxu1 %v128_v21  ;;  %442 = vmatpush3.msra.mxu0 %v227_v32 }
  0x30   :  { %443 = vmatprep.subr.mxu0 %v509_v0 }
  0x31   :  { %444 = vmatpush3.msra.mxu0 %v226_v33 }
  0x32   :  { %445 = vmatprep.subr.mxu0 %v509_v0 }
  0x33   :  { %446 = vmatpush3.msra.mxu0 %v225_v34 }
  0x34   :  { %447 = vmatprep.subr.mxu0 %v509_v0 }
  0x35   :  { %448 = vmatpush3.msra.mxu0 %v224_v40 }
  0x36   :  { %449 = vmatprep.subr.mxu0 %v509_v0 }
  0x37   :  { %450 = vmatpush3.msra.mxu0 %v223_v41 }
  0x38   :  { %451 = vmatprep.subr.mxu0 %v509_v0 }
  0x39   :  { %452 = vmatpush3.msra.mxu0 %v222_v42 }
  0xd8   :  { %v123_v36 = vpop.f32.mrf.mxu0 }
  0xd9   :  { %v124_v37 = vadd.f32 %v332_v35, %v123_v36 }
  0xda   :  { %v385_v38 = vpop.f32.mrf.mxu0 }
  0xdb   :  { %v127_v39 = vmax.f32 %v124_v37, 0.0 }
  0xdd   :  { %419 = vmatmul.mubr.f32.vlgmr.msra.gmra.mxu1 %v127_v39 }
 0x19d   :  { %v217_v44 = vpop.f32.mrf.mxu1 }
 0x19e   :  { %v218_v45 = vadd.f32 %v334_v43, %v217_v44 }
 0x19f   :  { %v420_v46 = vpop.f32.mrf.mxu1 }
 0x1a0   :  { %v221_v47 = vmax.f32 %v218_v45, 0.0 }
 0x1a2   :  { %454 = vmatmul.mubr.f32.vlgmr.msra.gmra.mxu0 %v221_v47 }
 0x262   :  { %v311_v49 = vpop.f32.mrf.mxu0 }
 0x263   :  { %v312_v50 = vadd.f32 %v335_v48, %v311_v49 }
 0x264   :  { %v455_v51 = vpop.f32.mrf.mxu0 }
 0x265   :  { %316 = vst.msk [vmem:[#allocation5] sm:$0xff] %vm315_vm2, %v312_v50 }
 0x266   :  { %493 = shalt.err (!%p490_p9)
}
 0x267   :  { %326 = dma.vmem_to_hbm [thread:$0]  %s324_s26, 128, %s715_s7, [#allocation4]  }
 0x268   :  { %504 = dma.done.wait [#allocation4], 128  }
 0x269   :  { %505 = vsyncadd [#allocation4], 4294967168 }
 0x26a   :  { %330 = vsyncpa [#allocation3], 1 }
 0x26b   :  { %331 = vsyncpa [#allocation4], 1 }

</bundles_post_ra>
